<compile_context>
chip_gen: v6e
topology: v6e:2x2x1
jax: 0.10.0
libtpu: 0.0.40
codegen_flags: <defaults>
</compile_context>

<pallas_src>
import functools

import jax
import jax.numpy as jnp
from jax.experimental import pallas as pl
from jax.experimental.pallas import tpu as pltpu


def _round_up(x, m):
    return ((x + m - 1) // m) * m


def simplenet_kernel(x_ref, w1_ref, w2_ref, b2_ref, o_ref):
    # x_ref : (11, TB)  f32   [x^T ; ones] -- batch on lanes (lane-dense input tile)
    # w1_ref: (50, 11)  f32   [W1^T | b1]  -- resident across the grid
    # w2_ref: (1, 50)   f32   W2^T         -- resident
    # b2_ref: (1, 1)    f32   SMEM scalar
    # o_ref : (1, TB)   f32   lane-dense output slab
    h = jnp.dot(w1_ref[...], x_ref[...], preferred_element_type=jnp.float32)  # (50, TB) MXU, b1 folded in
    h = jnp.maximum(h, 0.0)                                                   # single VPU pass (ReLU)
    y = jnp.dot(w2_ref[...], h, preferred_element_type=jnp.float32)           # (1, TB)  MXU (fc2)
    o_ref[...] = (y + b2_ref[0, 0]).astype(o_ref.dtype)


@functools.partial(jax.jit, static_argnames=("batch_tile", "target_steps"))
def simplenet_forward(x, w1, b1, w2, b2, *, batch_tile=32768, target_steps=4):
    """x: (B, 10); w1: (10, 50); b1: (1, 50); w2: (50, 1); b2: (1, 1). Returns (B, 1) f32."""
    B, f_in = x.shape
    f_hid = w1.shape[1]
    f_aug = f_in + 1  # ones row for folded b1

    # ---- adaptive lane tile: multiple of 128, aim for >= target_steps grid steps, cap by batch_tile ----
    tb = min(batch_tile, max(128, _round_up(pl.cdiv(B, target_steps), 128)))
    b_pad = _round_up(B, tb)
    grid = (b_pad // tb,)

    # ---- wrapper-side layout plumbing (batch -> lane axis, bias fold, pad) ----
    x32 = x.astype(jnp.float32)
    x_aug = jnp.concatenate([x32.T, jnp.ones((1, B), jnp.float32)], axis=0)        # (11, B)
    x_aug = jnp.pad(x_aug, ((0, 0), (0, b_pad - B)))                               # (11, b_pad)
    w1_aug = jnp.concatenate(
        [w1.T.astype(jnp.float32), b1.reshape(f_hid, 1).astype(jnp.float32)],
        axis=1)                                                                     # (50, 11)
    w2_row = w2.reshape(f_hid, 1).T.astype(jnp.float32)                             # (1, 50)
    b2_s = b2.reshape(1, 1).astype(jnp.float32)                                     # (1, 1) -> SMEM

    cost = pl.CostEstimate(
        flops=2 * b_pad * f_aug * f_hid + 2 * b_pad * f_hid + b_pad * f_hid,
        transcendentals=0,
        bytes_accessed=(x_aug.size * 4 + b_pad * 4 + w1_aug.size * 4
                        + w2_row.size * 4 + 4))

    y_pad = pl.pallas_call(
        simplenet_kernel,
        out_shape=jax.ShapeDtypeStruct((1, b_pad), jnp.float32),
        grid=grid,
        in_specs=[
            pl.BlockSpec((f_aug, tb), lambda i: (0, i)),      # x_aug^T: batch tile on lanes
            pl.BlockSpec((f_hid, f_aug), lambda i: (0, 0)),   # [W1^T | b1] resident
            pl.BlockSpec((1, f_hid), lambda i: (0, 0)),       # W2^T resident
            pl.BlockSpec(memory_space=pltpu.SMEM),            # b2 scalar
        ],
        out_specs=pl.BlockSpec((1, tb), lambda i: (0, i)),    # lane-dense output slab
        compiler_params=pltpu.CompilerParams(
            # Shard the batch grid across TensorCores on multi-TC chips (v7x);
            # harmless no-op on single-TC v5e/v6e.
            dimension_semantics=("parallel",),
        ),
        cost_estimate=cost,
    )(x_aug, w1_aug, w2_row, b2_s)

    return y_pad[:, :B].T                                     # (B, 1), padding dropped


def init_params(key):
    """Deterministic init mimicking nn.Linear default (uniform +/- 1/sqrt(fan_in))."""
    k1, k2, k3, k4 = jax.random.split(key, 4)
    in1, out1 = 10, 50
    in2, out2 = 50, 1
    bound1 = 1.0 / jnp.sqrt(in1)
    bound2 = 1.0 / jnp.sqrt(in2)
    w1 = jax.random.uniform(k1, (in1, out1), jnp.float32, -bound1, bound1)
    b1 = jax.random.uniform(k2, (1, out1), jnp.float32, -bound1, bound1)
    w2 = jax.random.uniform(k3, (in2, out2), jnp.float32, -bound2, bound2)
    b2 = jax.random.uniform(k4, (1, out2), jnp.float32, -bound2, bound2)
    return w1, b1, w2, b2


if __name__ == "__main__":
    key = jax.random.PRNGKey(0)
    k_x, k_p, k_x2 = jax.random.split(key, 3)

    # Small shapes consistent with the module.
    B = 8
    x = jax.random.normal(k_x, (B, 10), jnp.float32)
    w1, b1, w2, b2 = init_params(k_p)

    out = simplenet_forward(x, w1, b1, w2, b2)
    out = jax.block_until_ready(out)

    ref = jnp.maximum(x @ w1 + b1, 0.0) @ w2 + b2
    assert out.shape == (B, 1)
    # MXU f32 matmuls (default precision) -> modest tolerance.
    assert jnp.allclose(out, ref, atol=2e-2, rtol=2e-2), float(jnp.max(jnp.abs(out - ref)))

    # Exercise the multi-tile path: grid > 1 and a padded final tile (B not a tile multiple).
    B2 = 300
    x2 = jax.random.normal(k_x2, (B2, 10), jnp.float32)
    out2 = jax.block_until_ready(
        simplenet_forward(x2, w1, b1, w2, b2, batch_tile=128))
    ref2 = jnp.maximum(x2 @ w1 + b1, 0.0) @ w2 + b2
    assert out2.shape == (B2, 1)
    assert jnp.allclose(out2, ref2, atol=2e-2, rtol=2e-2), float(jnp.max(jnp.abs(out2 - ref2)))

    print("KERNEL_OK")
</pallas_src>

<mosaic_0001>
module attributes {stable_mosaic.version = 11 : i64} {
  func.func @simplenet_kernel(%arg0: i32, %arg1: memref<11x128xf32, #tpu.memory_space<vmem>>, %arg2: memref<50x11xf32, #tpu.memory_space<vmem>>, %arg3: memref<1x50xf32, #tpu.memory_space<vmem>>, %arg4: memref<1x1xf32, #tpu.memory_space<smem>>, %arg5: memref<1x128xf32, #tpu.memory_space<vmem>>) attributes {dimension_semantics = [#tpu.dimension_semantics<parallel>], iteration_bounds = array<i64: 1>, scalar_prefetch = 0 : i64, scratch_operands = 0 : i64, tpu.core_type = #tpu.core_type<tc>, window_params = [{transform_indices = @transform_0, window_bounds = array<i64: 11, 128>}, {pipeline_mode = #tpu.pipeline_mode<synchronous>, transform_indices = @transform_1, window_bounds = array<i64: 50, 11>}, {pipeline_mode = #tpu.pipeline_mode<synchronous>, transform_indices = @transform_2, window_bounds = array<i64: 1, 50>}, {transform_indices = @transform_3, window_bounds = array<i64: 1, 1>}, {transform_indices = @transform_4, window_bounds = array<i64: 1, 128>}]} {
    %c0 = arith.constant 0 : index
    %c0_0 = arith.constant 0 : index
    %0 = vector.load %arg2[%c0, %c0_0] : memref<50x11xf32, #tpu.memory_space<vmem>>, vector<50x11xf32>
    %c0_1 = arith.constant 0 : index
    %c0_2 = arith.constant 0 : index
    %1 = vector.load %arg1[%c0_1, %c0_2] : memref<11x128xf32, #tpu.memory_space<vmem>>, vector<11x128xf32>
    %cst = arith.constant dense<0.000000e+00> : vector<50x128xf32>
    %2 = tpu.matmul %0, %1, %cst {dimension_numbers = #tpu.dot_dimension_numbers<[1], [0], [0], [1], [0, 0, 1, 1], [], []>} : vector<50x11xf32>, vector<11x128xf32>, vector<50x128xf32> -> vector<50x128xf32>
    %cst_3 = arith.constant 0.000000e+00 : f32
    %3 = vector.broadcast %cst_3 : f32 to vector<50x128xf32>
    %4 = arith.maximumf %2, %3 : vector<50x128xf32>
    %c0_4 = arith.constant 0 : index
    %c0_5 = arith.constant 0 : index
    %5 = vector.load %arg3[%c0_4, %c0_5] : memref<1x50xf32, #tpu.memory_space<vmem>>, vector<1x50xf32>
    %cst_6 = arith.constant dense<0.000000e+00> : vector<1x128xf32>
    %6 = tpu.matmul %5, %4, %cst_6 {dimension_numbers = #tpu.dot_dimension_numbers<[1], [0], [0], [1], [0, 0, 1, 1], [], []>} : vector<1x50xf32>, vector<50x128xf32>, vector<1x128xf32> -> vector<1x128xf32>
    %c0_7 = arith.constant 0 : index
    %c0_8 = arith.constant 0 : index
    %7 = memref.load %arg4[%c0_7, %c0_8] : memref<1x1xf32, #tpu.memory_space<smem>>
    %8 = vector.broadcast %7 : f32 to vector<1x128xf32>
    %9 = arith.addf %6, %8 : vector<1x128xf32>
    %c0_9 = arith.constant 0 : index
    %c0_10 = arith.constant 0 : index
    %10 = vector.load %arg5[%c0_9, %c0_10] : memref<1x128xf32, #tpu.memory_space<vmem>>, vector<1x128xf32>
    tpu.vector_store %arg5[%c0_9, %c0_10], %9 {strides = array<i32>} : memref<1x128xf32, #tpu.memory_space<vmem>>, vector<1x128xf32>,
    return
  }
  func.func @transform_0(%arg0: i32) -> (i32, i32) {
    %c0_i32 = arith.constant 0 : i32
    %c0_i32_0 = arith.constant 0 : i32
    return %c0_i32, %arg0 : i32, i32
  }
  func.func @transform_1(%arg0: i32) -> (i32, i32) {
    %c0_i32 = arith.constant 0 : i32
    %c0_i32_0 = arith.constant 0 : i32
    %c0_i32_1 = arith.constant 0 : i32
    return %c0_i32, %c0_i32_0 : i32, i32
  }
  func.func @transform_2(%arg0: i32) -> (i32, i32) {
    %c0_i32 = arith.constant 0 : i32
    %c0_i32_0 = arith.constant 0 : i32
    %c0_i32_1 = arith.constant 0 : i32
    return %c0_i32, %c0_i32_0 : i32, i32
  }
  func.func @transform_3(%arg0: i32) -> (i32, i32) {
    %c0_i32 = arith.constant 0 : i32
    %c0_i32_0 = arith.constant 0 : i32
    %c0_i32_1 = arith.constant 0 : i32
    return %c0_i32, %c0_i32_0 : i32, i32
  }
  func.func @transform_4(%arg0: i32) -> (i32, i32) {
    %c0_i32 = arith.constant 0 : i32
    %c0_i32_0 = arith.constant 0 : i32
    return %c0_i32, %arg0 : i32, i32
  }
}

</mosaic_0001>

<bundles_post_ra>
// kernel: simplenet_forward.1
= control target key start
LH: loop header
LB: loop body
LE: loop exit
PB: predicated region body
PF: predicated region fallthrough
CT: control target
= control target key end

     0   :  { %vm49_vm0 = vcmask 1042432   ;;  %v317_v0 = vmov 0.0   ;;  %vm318_vm1 = vmmov 0   ;;  %vm27_vm2 = vcmask 89088   ;;  %s412_s0 = inlined_call_operand.vmem [shape: f32[11,128], index: 0, kind: input, shape index: {}]   ;;  %s413_s1 = inlined_call_operand.vmem [shape: f32[50,11], index: 1, kind: input, shape index: {}]   ;;  %s414_s2 = inlined_call_operand.vmem [shape: f32[1,50], index: 2, kind: input, shape index: {}]   ;;  %s415_s3 = inlined_call_operand.<no memory space> [shape: f32[1,1], index: 3, kind: input, shape index: {}]   ;;  %s416_s4 = inlined_call_operand.vmem [shape: f32[1,128], index: 4, kind: output, shape index: {}]  }
   0x1   :  { %273 = vmatprep.subr.mxu0 %v317_v0  ;;  %v26_v1 = vld [vmem:[%s412_s0 + $0x8] sm:$0x7]  ;;  %v25_v2 = vld [vmem:[%s412_s0] sm:$0xff]  ;;  %277 = vmatprep.mubr.msk.f32.mxu0 %vm318_vm1, %v317_v0  ;;  %v20_v5 = vld [vmem:[%s413_s1 + $0x10] sm:$0xff]  ;;  %vm167_vm3 = vcmask 1041408   ;;  %vm163_vm4 = vcmask 408576   ;;  %v162_v32 = vstv %s415_s3 }
   0x2   :  { %274 = vmatpush3.msk.msra.mxu0 %vm49_vm0, %v26_v1  ;;  %v18_v3 = vld [vmem:[%s413_s1] sm:$0xff]  ;;  %298 = vmatprep.subr.mxu1 %v317_v0  ;;  %v19_v4 = vld [vmem:[%s413_s1 + $0x8] sm:$0xff]  ;;  %v21_v6 = vld [vmem:[%s413_s1 + $0x18] sm:$0xff] }
   0x3   :  { %275 = vmatprep.subr.mxu0 %v317_v0  ;;  %312 = vmatprep.mubr.msk.f32.mxu1 %vm318_vm1, %v317_v0  ;;  %v22_v7 = vld [vmem:[%s413_s1 + $0x20] sm:$0xff]  ;;  %v23_v8 = vld [vmem:[%s413_s1 + $0x28] sm:$0xff]  ;;  %v24_v9 = vld [vmem:[%s413_s1 + $0x30] sm:$0x3] }
   0x4   :  { %276 = vmatpush3.msra.mxu0 %v25_v2  ;;  %v160_v31 = vld [vmem:[%s414_s2] sm:$0x1] }
   0x5   :  { %278 = vmatmul.mubr.msk.f32.vlgmr.msra.gmra.mxu0 %vm27_vm2, %v18_v3 }
   0x6   :  { %280 = vmatprep.mubr.msk.f32.mxu0 %vm318_vm1, %v317_v0 }
   0x9   :  { %281 = vmatmul.mubr.msk.f32.gmra.mxu0 %vm27_vm2, %v19_v4 }
   0xa   :  { %283 = vmatprep.mubr.msk.f32.mxu0 %vm318_vm1, %v317_v0 }
   0xd   :  { %284 = vmatmul.mubr.msk.f32.gmra.mxu0 %vm27_vm2, %v20_v5 }
   0xe   :  { %286 = vmatprep.mubr.msk.f32.mxu0 %vm318_vm1, %v317_v0 }
  0x11   :  { %287 = vmatmul.mubr.msk.f32.gmra.mxu0 %vm27_vm2, %v21_v6 }
  0x12   :  { %289 = vmatprep.mubr.msk.f32.mxu0 %vm318_vm1, %v317_v0 }
  0x15   :  { %290 = vmatmul.mubr.msk.f32.gmra.mxu0 %vm27_vm2, %v22_v7 }
  0x16   :  { %292 = vmatprep.mubr.msk.f32.mxu0 %vm318_vm1, %v317_v0 }
  0x19   :  { %293 = vmatmul.mubr.msk.f32.gmra.mxu0 %vm27_vm2, %v23_v8 }
  0x1a   :  { %295 = vmatprep.mubr.msk.f32.mxu0 %vm318_vm1, %v317_v0 }
  0x1d   :  { %296 = vmatmul.mubr.msk.f32.gmra.mxu0 %vm27_vm2, %v24_v9 }
  0xc5   :  { %v119_v10 = vpop.f32.mrf.mxu0 }
  0xc6   :  { %v153_v30 = vmax.f32 %v119_v10, 0.0 }
  0xc7   :  { %v279_v11 = vpop.f32.mrf.mxu0 }
  0xc9   :  { %v124_v12 = vpop.f32.mrf.mxu0 }
  0xca   :  { %v154_v29 = vmax.f32 %v124_v12, 0.0 }
  0xcb   :  { %v282_v13 = vpop.f32.mrf.mxu0 }
  0xcd   :  { %v129_v14 = vpop.f32.mrf.mxu0 }
  0xce   :  { %v155_v28 = vmax.f32 %v129_v14, 0.0 }
  0xcf   :  { %v285_v15 = vpop.f32.mrf.mxu0 }
  0xd1   :  { %v134_v16 = vpop.f32.mrf.mxu0 }
  0xd2   :  { %v156_v27 = vmax.f32 %v134_v16, 0.0 }
  0xd3   :  { %v288_v17 = vpop.f32.mrf.mxu0 }
  0xd5   :  { %v139_v18 = vpop.f32.mrf.mxu0 }
  0xd6   :  { %v157_v26 = vmax.f32 %v139_v18, 0.0 }
  0xd7   :  { %v291_v19 = vpop.f32.mrf.mxu0 }
  0xd9   :  { %v144_v20 = vpop.f32.mrf.mxu0 }
  0xda   :  { %v158_v25 = vmax.f32 %v144_v20, 0.0 }
  0xdb   :  { %v294_v21 = vpop.f32.mrf.mxu0 }
  0xdd   :  { %v149_v22 = vpop.f32.mrf.mxu0 }
  0xde   :  { %v159_v23 = vmax.f32 %v149_v22, 0.0 }
  0xdf   :  { %v297_v24 = vpop.f32.mrf.mxu0 }
  0xe0   :  { %299 = vmatpush3.msk.msra.mxu1 %vm167_vm3, %v159_v23 }
  0xe1   :  { %300 = vmatprep.subr.mxu1 %v317_v0 }
  0xe2   :  { %301 = vmatpush3.msra.mxu1 %v158_v25 }
  0xe3   :  { %302 = vmatprep.subr.mxu1 %v317_v0 }
  0xe4   :  { %303 = vmatpush3.msra.mxu1 %v157_v26 }
  0xe5   :  { %304 = vmatprep.subr.mxu1 %v317_v0 }
  0xe6   :  { %305 = vmatpush3.msra.mxu1 %v156_v27 }
  0xe7   :  { %306 = vmatprep.subr.mxu1 %v317_v0 }
  0xe8   :  { %307 = vmatpush3.msra.mxu1 %v155_v28 }
  0xe9   :  { %308 = vmatprep.subr.mxu1 %v317_v0 }
  0xea   :  { %309 = vmatpush3.msra.mxu1 %v154_v29 }
  0xeb   :  { %310 = vmatprep.subr.mxu1 %v317_v0 }
  0xec   :  { %311 = vmatpush3.msra.mxu1 %v153_v30 }
  0xed   :  { %313 = vmatmul.mubr.msk.f32.vlgmr.msra.gmra.mxu1 %vm163_vm4, %v160_v31 }
 0x1ad   :  { %v237_v33 = vpop.f32.mrf.mxu1 }
 0x1ae   :  { %v238_v34 = vadd.f32 %v237_v33, %v162_v32 }
 0x1af   :  { %v314_v35 = vpop.f32.mrf.mxu1 }
 0x1b0   :  { %241 = vst [vmem:[%s416_s4] sm:$0x1] %v238_v34 }

</bundles_post_ra>
